<compile_context>
chip_gen: v5e
topology: v5e:2x2
jax: 0.10.0
libtpu: 0.0.40
codegen_flags: <defaults>
</compile_context>

<pallas_src>
import functools

import jax
import jax.numpy as jnp
from jax.experimental import pallas as pl
from jax.experimental.pallas import tpu as pltpu


# --------------------------------- helpers --------------------------------- #

def _round_up(x, m):
    return (x + m - 1) // m * m


def _tile_dim(dim, cap, align):
    """Pick a tile size (multiple of `align`, <= cap) and the padded extent."""
    padded = _round_up(dim, align)
    tile = min(cap, padded)
    return tile, _round_up(padded, tile)


def _pad_to(x, shape):
    pads = [(0, s - d) for d, s in zip(x.shape, shape)]
    if any(hi for _, hi in pads):
        x = jnp.pad(x, pads)
    return x


# --------------------- tiled batched matmul (MXU) kernels ------------------- #

def _bmm_kernel(lhs_ref, rhs_ref, out_ref, acc_ref, *, relu):
    # P3 accumulator pattern: K is the innermost ("arbitrary") grid axis.
    @pl.when(pl.program_id(3) == 0)
    def _init():
        acc_ref[...] = jnp.zeros_like(acc_ref)

    acc_ref[...] += jnp.dot(lhs_ref[...], rhs_ref[...],
                            preferred_element_type=jnp.float32)

    @pl.when(pl.program_id(3) == pl.num_programs(3) - 1)
    def _store():
        r = acc_ref[...]
        if relu:                       # fused epilogue: ReLU in f32, then cast
            r = jnp.maximum(r, 0.0)
        out_ref[...] = r.astype(out_ref.dtype)


def _bmm_stats_kernel(lhs_ref, rhs_ref, out_ref, sum_ref, ssq_ref, acc_ref):
    # grid = (j, b, i, k): channel-tile j outermost so the per-channel stats
    # block (0, j) is revisited on *consecutive* steps and stays VMEM-resident
    # across all (b, i, k); zero-padded rows/channels contribute 0 to the sums.
    @pl.when((pl.program_id(1) == 0) & (pl.program_id(2) == 0)
             & (pl.program_id(3) == 0))
    def _init_stats():
        sum_ref[...] = jnp.zeros_like(sum_ref)
        ssq_ref[...] = jnp.zeros_like(ssq_ref)

    @pl.when(pl.program_id(3) == 0)
    def _init_acc():
        acc_ref[...] = jnp.zeros_like(acc_ref)

    acc_ref[...] += jnp.dot(lhs_ref[...], rhs_ref[...],
                            preferred_element_type=jnp.float32)

    @pl.when(pl.program_id(3) == pl.num_programs(3) - 1)
    def _store():
        r = acc_ref[...]
        out_ref[...] = r.astype(out_ref.dtype)
        sum_ref[...] += jnp.sum(r, axis=0, keepdims=True)
        ssq_ref[...] += jnp.sum(r * r, axis=0, keepdims=True)


def bmm(lhs, rhs, out_dtype=jnp.float32, *, relu=False, stats=False,
        tm_cap=512, tn_cap=256, tk_cap=512):
    """(B, M, K) @ (B, K, N) -> (B, Mp, Np); bf16 operands, f32 accumulate.

    M is zero-padded to a multiple of the row tile, N to a multiple of 128 so
    output stores are lane-dense.  The PADDED result is returned (callers slice
    the valid region) so downstream kernels keep lane-dense tiles.  Tile caps
    are conservative for v7x's 64 MiB VMEM and also fit v5e/v6e (128 MiB).

    relu=True  : fuse max(.,0) into the store epilogue.
    stats=True : additionally return per-column sum and sum-of-squares of the
                 f32 result, accumulated across batch and rows (BN batch stats).
    """
    B, M, K = lhs.shape
    _, _, N = rhs.shape
    tm, Mp = _tile_dim(M, tm_cap, 8)
    tn, Np = _tile_dim(N, tn_cap, 128)
    if K <= tk_cap:                 # single full-K block (divisibility exemption)
        tk, Kp = K, K
    else:
        tk = tk_cap
        Kp = _round_up(K, tk)
    lhs = _pad_to(lhs, (B, Mp, Kp))
    rhs = _pad_to(rhs, (B, Kp, Np))

    if not stats:
        grid = (B, Mp // tm, Np // tn, Kp // tk)
        return pl.pallas_call(
            functools.partial(_bmm_kernel, relu=relu),
            out_shape=jax.ShapeDtypeStruct((B, Mp, Np), out_dtype),
            grid=grid,
            in_specs=[
                pl.BlockSpec((pl.Squeezed(), tm, tk), lambda b, i, j, k: (b, i, k)),
                pl.BlockSpec((pl.Squeezed(), tk, tn), lambda b, i, j, k: (b, k, j)),
            ],
            out_specs=pl.BlockSpec((pl.Squeezed(), tm, tn),
                                   lambda b, i, j, k: (b, i, j)),
            scratch_shapes=[pltpu.VMEM((tm, tn), jnp.float32)],
            compiler_params=pltpu.CompilerParams(
                dimension_semantics=("parallel", "parallel", "parallel",
                                     "arbitrary")),
        )(lhs, rhs)

    assert not relu
    grid = (Np // tn, B, Mp // tm, Kp // tk)
    return pl.pallas_call(
        _bmm_stats_kernel,
        out_shape=(jax.ShapeDtypeStruct((B, Mp, Np), out_dtype),
                   jax.ShapeDtypeStruct((1, Np), jnp.float32),
                   jax.ShapeDtypeStruct((1, Np), jnp.float32)),
        grid=grid,
        in_specs=[
            pl.BlockSpec((pl.Squeezed(), tm, tk), lambda j, b, i, k: (b, i, k)),
            pl.BlockSpec((pl.Squeezed(), tk, tn), lambda j, b, i, k: (b, k, j)),
        ],
        out_specs=(
            pl.BlockSpec((pl.Squeezed(), tm, tn), lambda j, b, i, k: (b, i, j)),
            pl.BlockSpec((1, tn), lambda j, b, i, k: (0, j)),
            pl.BlockSpec((1, tn), lambda j, b, i, k: (0, j)),
        ),
        scratch_shapes=[pltpu.VMEM((tm, tn), jnp.float32)],
        compiler_params=pltpu.CompilerParams(
            # b, i are reduction axes for the stats outputs -> "arbitrary".
            dimension_semantics=("parallel", "arbitrary", "arbitrary",
                                 "arbitrary")),
    )(lhs, rhs)


# ------------------ BatchNorm apply on (rows, channels-on-lanes) ------------ #

def _bn_apply_kernel(x_ref, scale_ref, bias_ref, o_ref):
    o_ref[...] = x_ref[...] * scale_ref[...] + bias_ref[...]


def bn_apply_lanes(slab, scale, bias, tr_cap=1024):
    """x*scale + bias over a (rows, C) slab with C on the lane axis."""
    R, C = slab.shape
    tr, Rp = _tile_dim(R, tr_cap, 8)
    slab = _pad_to(slab, (Rp, C))
    grid = (Rp // tr,)
    y = pl.pallas_call(
        _bn_apply_kernel,
        out_shape=jax.ShapeDtypeStruct((Rp, C), jnp.float32),
        grid=grid,
        in_specs=[pl.BlockSpec((tr, C), lambda i: (i, 0)),
                  pl.BlockSpec((1, C), lambda i: (0, 0)),
                  pl.BlockSpec((1, C), lambda i: (0, 0))],
        out_specs=pl.BlockSpec((tr, C), lambda i: (i, 0)),
        compiler_params=pltpu.CompilerParams(dimension_semantics=("parallel",)),
    )(slab, scale, bias)
    return y[:R]


# -------------------------------- convolutions ------------------------------ #

# ConvT kernel-index per (output phase, 2x2 window row):  phase 0 -> taps (3,1),
# phase 1 -> taps (2,0)   (out[2m+0] = w1*in[m] + w3*in[m-1]; out[2m+1] = w0*in[m+1] + w2*in[m])
_KTAPS = ((3, 1), (2, 0))


def conv_down_relu_4x4_s2(x, w):
    """LeakyReLU(0.2) -> Conv2d(k=4, s=2, p=1, bias=False) -> ReLU (fused).

    x: NCHW f32.  Returns (N, H/2, W/2, F) bf16, already ReLU'd (the up-path
    activation), so the ConvT stage consumes it directly.
    """
    N, C, H, W = x.shape
    F = w.shape[0]
    a = jnp.where(x > 0, x, 0.2 * x).astype(jnp.bfloat16)       # act in f32, MXU in bf16
    patches = jax.lax.conv_general_dilated_patches(             # strided slices, no gather
        a, (4, 4), (2, 2), ((1, 1), (1, 1)),
        dimension_numbers=("NCHW", "OIHW", "NHWC"))             # (N, H/2, W/2, C*16)
    Hd, Wd = H // 2, W // 2
    lhs = patches.reshape(1, N * Hd * Wd, C * 16)
    rhs = w.reshape(F, C * 16).T.astype(jnp.bfloat16)[None]     # (1, C*16, F)
    h = bmm(lhs, rhs, out_dtype=jnp.bfloat16, relu=True)        # bf16 out halves HBM
    return h[0, :N * Hd * Wd, :F].reshape(N, Hd, Wd, F)         # NHWC, ReLU'd


def convT_up_4x4_s2_phases(h_nhwc, wt):
    """ConvTranspose2d(k=4, s=2, p=1, bias=False), sub-pixel (4-phase) form.

    Input is the already-ReLU'd bf16 downconv output.  Returns the padded
    per-phase matmul outputs (4, Mp, Cp) f32 plus fused per-channel batch
    statistics (sum, sum-of-squares over all 4*M rows) and (M_true, Cout);
    out[n, c, 2m+p, 2w+q] = phases[2p+q, n*Hd*Wd + m*Wd + w, c].
    """
    N, Hd, Wd, Cin = h_nhwc.shape
    Cout = wt.shape[1]
    lhs, rhs = [], []
    for p in (0, 1):
        for q in (0, 1):
            pt = jax.lax.conv_general_dilated_patches(
                h_nhwc, (2, 2), (1, 1), ((1 - p, p), (1 - q, q)),
                dimension_numbers=("NHWC", "HWIO", "NHWC"))     # (N, Hd, Wd, Cin*4)
            lhs.append(pt.reshape(N * Hd * Wd, Cin * 4))
            wp = jnp.take(jnp.take(wt, jnp.asarray(_KTAPS[p]), axis=2),
                          jnp.asarray(_KTAPS[q]), axis=3)       # (Cin, Cout, 2, 2)
            rhs.append(wp.transpose(0, 2, 3, 1).reshape(Cin * 4, Cout))
    lhs = jnp.stack(lhs)                                        # (4, M, Cin*4) bf16
    rhs = jnp.stack(rhs).astype(jnp.bfloat16)                   # (4, Cin*4, Cout)
    u, s, ss = bmm(lhs, rhs, out_dtype=jnp.float32, stats=True) # (4, Mp, Cp) + stats
    return u, s, ss, N * Hd * Wd, Cout


def unet_block_innermost(x, params, eps=1e-5):
    """forward(x) = concat([x, upnorm(upconv(uprelu(downconv(downrelu(x)))))], ch)."""
    N, _, H, W = x.shape
    assert H % 2 == 0 and W % 2 == 0

    h = conv_down_relu_4x4_s2(x, params["down_w"])              # (N, H/2, W/2, ni) bf16
    u, s, ss, M, Cout = convT_up_4x4_s2_phases(h, params["up_w"])
    _, Mp, Cp = u.shape

    # BatchNorm2d (training mode, batch stats, biased variance); scalar math in
    # XLA on tiny (1, Cp) vectors, heavy apply pass in Pallas.
    count = float(N * H * W)                                    # valid rows per channel
    inv_n = 1.0 / count
    mean = s * inv_n
    var = jnp.maximum(ss * inv_n - mean * mean, 0.0)
    gamma = _pad_to(params["bn_gamma"].reshape(1, -1).astype(jnp.float32), (1, Cp))
    beta = _pad_to(params["bn_beta"].reshape(1, -1).astype(jnp.float32), (1, Cp))
    scale = gamma * jax.lax.rsqrt(var + eps)
    bias = beta - mean * scale
    y = bn_apply_lanes(u.reshape(4 * Mp, Cp), scale, bias)

    Hd, Wd = H // 2, W // 2
    y = y.reshape(4, Mp, Cp)[:, :M, :Cout]                      # drop pad rows/channels
    y = (y.reshape(2, 2, N, Hd, Wd, Cout)                       # (p, q, n, m, w, c)
           .transpose(2, 5, 3, 0, 4, 1)                         # (n, c, m, p, w, q)
           .reshape(N, Cout, H, W))
    # TODO(synk): write both halves in place (input_output_aliases) instead of
    # paying an extra HBM round trip for the re-layout + concat.
    return jnp.concatenate([x, y.astype(x.dtype)], axis=1)


def init_params(key, nf, ni, input_c):
    k1, k2 = jax.random.split(key)
    return {
        "down_w": 0.05 * jax.random.normal(k1, (ni, input_c, 4, 4), jnp.float32),
        "up_w": 0.05 * jax.random.normal(k2, (ni, nf, 4, 4), jnp.float32),
        "bn_gamma": jnp.ones((nf,), jnp.float32),   # BatchNorm2d default weight
        "bn_beta": jnp.zeros((nf,), jnp.float32),   # BatchNorm2d default bias
    }


def _reference(x, params):
    """Pure-lax reference with the same bf16-operand / f32-accumulate precision."""
    a = jnp.where(x > 0, x, 0.2 * x).astype(jnp.bfloat16)
    h = jax.lax.conv_general_dilated(
        a, params["down_w"].astype(jnp.bfloat16), (2, 2), ((1, 1), (1, 1)),
        dimension_numbers=("NCHW", "OIHW", "NCHW"),
        preferred_element_type=jnp.float32)
    hb = jnp.maximum(h, 0.0).astype(jnp.bfloat16)
    wflip = jnp.flip(params["up_w"], (2, 3)).transpose(1, 0, 2, 3).astype(jnp.bfloat16)
    u = jax.lax.conv_general_dilated(
        hb, wflip, (1, 1), ((2, 2), (2, 2)), lhs_dilation=(2, 2),
        dimension_numbers=("NCHW", "OIHW", "NCHW"),
        preferred_element_type=jnp.float32)
    mean = u.mean(axis=(0, 2, 3), keepdims=True)
    var = u.var(axis=(0, 2, 3), keepdims=True)                  # biased
    g = params["bn_gamma"].reshape(1, -1, 1, 1)
    b = params["bn_beta"].reshape(1, -1, 1, 1)
    y = (u - mean) * jax.lax.rsqrt(var + 1e-5) * g + b
    return jnp.concatenate([x, y.astype(x.dtype)], axis=1)


if __name__ == "__main__":
    nf, ni = 4, 8
    N, H, W = 2, 16, 16

    key = jax.random.PRNGKey(0)
    kx, kp = jax.random.split(key)
    x = jax.random.normal(kx, (N, nf, H, W), jnp.float32)
    params = init_params(kp, nf=nf, ni=ni, input_c=nf)

    out = jax.block_until_ready(jax.jit(unet_block_innermost)(x, params))
    ref = jax.block_until_ready(_reference(x, params))

    assert out.shape == (N, 2 * nf, H, W), out.shape
    assert bool(jnp.all(jnp.isfinite(out)))
    assert bool(jnp.allclose(out[:, :nf], x))          # skip connection is exact
    err = float(jnp.max(jnp.abs(out - ref)))
    assert err < 0.1, f"max abs error vs lax reference: {err}"
    print("KERNEL_OK")
</pallas_src>

<mosaic_0001>
module attributes {stable_mosaic.version = 11 : i64} {
  func.func @_bmm_kernel(%arg0: i32, %arg1: i32, %arg2: i32, %arg3: i32, %arg4: memref<1x128x64xbf16, #tpu.memory_space<vmem>>, %arg5: memref<1x64x128xbf16, #tpu.memory_space<vmem>>, %arg6: memref<1x128x128xbf16, #tpu.memory_space<vmem>>, %arg7: memref<128x128xf32, #tpu.memory_space<vmem>>) attributes {dimension_semantics = [#tpu.dimension_semantics<parallel>, #tpu.dimension_semantics<parallel>, #tpu.dimension_semantics<parallel>, #tpu.dimension_semantics<arbitrary>], iteration_bounds = array<i64: 1, 1, 1, 1>, scalar_prefetch = 0 : i64, scratch_operands = 1 : i64, tpu.core_type = #tpu.core_type<tc>, window_params = [{transform_indices = @transform_0, window_bounds = array<i64: 1, 128, 64>}, {transform_indices = @transform_1, window_bounds = array<i64: 1, 64, 128>}, {transform_indices = @transform_2, window_bounds = array<i64: 1, 128, 128>}]} {
    %c0_i32 = arith.constant 0 : i32
    %0 = arith.cmpi eq, %arg3, %c0_i32 : i32
    %1 = arith.extui %0 : i1 to i32
    %c0_i32_0 = arith.constant 0 : i32
    %2 = arith.cmpi ne, %1, %c0_i32_0 : i32
    scf.if %2 {
      %cst_12 = arith.constant 0.000000e+00 : f32
      %14 = vector.broadcast %cst_12 : f32 to vector<128x128xf32>
      %c0_13 = arith.constant 0 : index
      %c0_14 = arith.constant 0 : index
      %15 = vector.load %arg7[%c0_13, %c0_14] : memref<128x128xf32, #tpu.memory_space<vmem>>, vector<128x128xf32>
      tpu.vector_store %arg7[%c0_13, %c0_14], %14 {strides = array<i32>} : memref<128x128xf32, #tpu.memory_space<vmem>>, vector<128x128xf32>,
    } else {
    }
    %c0 = arith.constant 0 : index
    %c0_1 = arith.constant 0 : index
    %3 = vector.load %arg7[%c0, %c0_1] : memref<128x128xf32, #tpu.memory_space<vmem>>, vector<128x128xf32>
    %c0_2 = arith.constant 0 : index
    %c0_3 = arith.constant 0 : index
    %c0_4 = arith.constant 0 : index
    %4 = vector.load %arg4[%c0_2, %c0_3, %c0_4] : memref<1x128x64xbf16, #tpu.memory_space<vmem>>, vector<1x128x64xbf16>
    %5 = vector.shape_cast %4 : vector<1x128x64xbf16> to vector<128x64xbf16>
    %c0_5 = arith.constant 0 : index
    %c0_6 = arith.constant 0 : index
    %c0_7 = arith.constant 0 : index
    %6 = vector.load %arg5[%c0_5, %c0_6, %c0_7] : memref<1x64x128xbf16, #tpu.memory_space<vmem>>, vector<1x64x128xbf16>
    %7 = vector.shape_cast %6 : vector<1x64x128xbf16> to vector<64x128xbf16>
    %cst = arith.constant dense<0.000000e+00> : vector<128x128xf32>
    %8 = tpu.matmul %5, %7, %cst {dimension_numbers = #tpu.dot_dimension_numbers<[1], [0], [0], [1], [0, 0, 1, 1], [], []>} : vector<128x64xbf16>, vector<64x128xbf16>, vector<128x128xf32> -> vector<128x128xf32>
    %9 = arith.addf %3, %8 : vector<128x128xf32>
    %c0_8 = arith.constant 0 : index
    %c0_9 = arith.constant 0 : index
    %10 = vector.load %arg7[%c0_8, %c0_9] : memref<128x128xf32, #tpu.memory_space<vmem>>, vector<128x128xf32>
    tpu.vector_store %arg7[%c0_8, %c0_9], %9 {strides = array<i32>} : memref<128x128xf32, #tpu.memory_space<vmem>>, vector<128x128xf32>,
    %c0_i32_10 = arith.constant 0 : i32
    %11 = arith.cmpi eq, %arg3, %c0_i32_10 : i32
    %12 = arith.extui %11 : i1 to i32
    %c0_i32_11 = arith.constant 0 : i32
    %13 = arith.cmpi ne, %12, %c0_i32_11 : i32
    scf.if %13 {
      %c0_12 = arith.constant 0 : index
      %c0_13 = arith.constant 0 : index
      %14 = vector.load %arg7[%c0_12, %c0_13] : memref<128x128xf32, #tpu.memory_space<vmem>>, vector<128x128xf32>
      %cst_14 = arith.constant 0.000000e+00 : f32
      %15 = vector.broadcast %cst_14 : f32 to vector<128x128xf32>
      %16 = arith.maximumf %14, %15 : vector<128x128xf32>
      %17 = arith.truncf %16 : vector<128x128xf32> to vector<128x128xbf16>
      %c0_15 = arith.constant 0 : index
      %c0_16 = arith.constant 0 : index
      %c0_17 = arith.constant 0 : index
      %18 = vector.load %arg6[%c0_15, %c0_16, %c0_17] : memref<1x128x128xbf16, #tpu.memory_space<vmem>>, vector<1x128x128xbf16>
      %19 = vector.shape_cast %18 : vector<1x128x128xbf16> to vector<128x128xbf16>
      %20 = vector.shape_cast %17 : vector<128x128xbf16> to vector<1x128x128xbf16>
      tpu.vector_store %arg6[%c0_15, %c0_16, %c0_17], %20 {strides = array<i32>} : memref<1x128x128xbf16, #tpu.memory_space<vmem>>, vector<1x128x128xbf16>,
    } else {
    }
    return
  }
  func.func @transform_0(%arg0: i32, %arg1: i32, %arg2: i32, %arg3: i32) -> (i32, i32, i32) {
    %c0_i32 = arith.constant 0 : i32
    return %arg0, %arg1, %arg3 : i32, i32, i32
  }
  func.func @transform_1(%arg0: i32, %arg1: i32, %arg2: i32, %arg3: i32) -> (i32, i32, i32) {
    %c0_i32 = arith.constant 0 : i32
    return %arg0, %arg3, %arg2 : i32, i32, i32
  }
  func.func @transform_2(%arg0: i32, %arg1: i32, %arg2: i32, %arg3: i32) -> (i32, i32, i32) {
    %c0_i32 = arith.constant 0 : i32
    return %arg0, %arg1, %arg2 : i32, i32, i32
  }
}

module attributes {stable_mosaic.version = 11 : i64} {
  func.func @_bmm_stats_kernel(%arg0: i32, %arg1: i32, %arg2: i32, %arg3: i32, %arg4: memref<1x128x32xbf16, #tpu.memory_space<vmem>>, %arg5: memref<1x32x128xbf16, #tpu.memory_space<vmem>>, %arg6: memref<1x128x128xf32, #tpu.memory_space<vmem>>, %arg7: memref<1x128xf32, #tpu.memory_space<vmem>>, %arg8: memref<1x128xf32, #tpu.memory_space<vmem>>, %arg9: memref<128x128xf32, #tpu.memory_space<vmem>>) attributes {dimension_semantics = [#tpu.dimension_semantics<parallel>, #tpu.dimension_semantics<arbitrary>, #tpu.dimension_semantics<arbitrary>, #tpu.dimension_semantics<arbitrary>], iteration_bounds = array<i64: 1, 4, 1, 1>, scalar_prefetch = 0 : i64, scratch_operands = 1 : i64, tpu.core_type = #tpu.core_type<tc>, window_params = [{transform_indices = @transform_0, window_bounds = array<i64: 1, 128, 32>}, {transform_indices = @transform_1, window_bounds = array<i64: 1, 32, 128>}, {transform_indices = @transform_2, window_bounds = array<i64: 1, 128, 128>}, {transform_indices = @transform_3, window_bounds = array<i64: 1, 128>}, {transform_indices = @transform_4, window_bounds = array<i64: 1, 128>}]} {
    %c0_i32 = arith.constant 0 : i32
    %0 = arith.cmpi eq, %arg1, %c0_i32 : i32
    %c0_i32_0 = arith.constant 0 : i32
    %1 = arith.cmpi eq, %arg2, %c0_i32_0 : i32
    %2 = arith.andi %0, %1 : i1
    %c0_i32_1 = arith.constant 0 : i32
    %3 = arith.cmpi eq, %arg3, %c0_i32_1 : i32
    %4 = arith.andi %2, %3 : i1
    %5 = arith.extui %4 : i1 to i32
    %c0_i32_2 = arith.constant 0 : i32
    %6 = arith.cmpi ne, %5, %c0_i32_2 : i32
    scf.if %6 {
      %cst_16 = arith.constant 0.000000e+00 : f32
      %21 = vector.broadcast %cst_16 : f32 to vector<1x128xf32>
      %c0_17 = arith.constant 0 : index
      %c0_18 = arith.constant 0 : index
      %22 = vector.load %arg7[%c0_17, %c0_18] : memref<1x128xf32, #tpu.memory_space<vmem>>, vector<1x128xf32>
      tpu.vector_store %arg7[%c0_17, %c0_18], %21 {strides = array<i32>} : memref<1x128xf32, #tpu.memory_space<vmem>>, vector<1x128xf32>,
      %cst_19 = arith.constant 0.000000e+00 : f32
      %23 = vector.broadcast %cst_19 : f32 to vector<1x128xf32>
      %c0_20 = arith.constant 0 : index
      %c0_21 = arith.constant 0 : index
      %24 = vector.load %arg8[%c0_20, %c0_21] : memref<1x128xf32, #tpu.memory_space<vmem>>, vector<1x128xf32>
      tpu.vector_store %arg8[%c0_20, %c0_21], %23 {strides = array<i32>} : memref<1x128xf32, #tpu.memory_space<vmem>>, vector<1x128xf32>,
    } else {
    }
    %c0_i32_3 = arith.constant 0 : i32
    %7 = arith.cmpi eq, %arg3, %c0_i32_3 : i32
    %8 = arith.extui %7 : i1 to i32
    %c0_i32_4 = arith.constant 0 : i32
    %9 = arith.cmpi ne, %8, %c0_i32_4 : i32
    scf.if %9 {
      %cst_16 = arith.constant 0.000000e+00 : f32
      %21 = vector.broadcast %cst_16 : f32 to vector<128x128xf32>
      %c0_17 = arith.constant 0 : index
      %c0_18 = arith.constant 0 : index
      %22 = vector.load %arg9[%c0_17, %c0_18] : memref<128x128xf32, #tpu.memory_space<vmem>>, vector<128x128xf32>
      tpu.vector_store %arg9[%c0_17, %c0_18], %21 {strides = array<i32>} : memref<128x128xf32, #tpu.memory_space<vmem>>, vector<128x128xf32>,
    } else {
    }
    %c0 = arith.constant 0 : index
    %c0_5 = arith.constant 0 : index
    %10 = vector.load %arg9[%c0, %c0_5] : memref<128x128xf32, #tpu.memory_space<vmem>>, vector<128x128xf32>
    %c0_6 = arith.constant 0 : index
    %c0_7 = arith.constant 0 : index
    %c0_8 = arith.constant 0 : index
    %11 = vector.load %arg4[%c0_6, %c0_7, %c0_8] : memref<1x128x32xbf16, #tpu.memory_space<vmem>>, vector<1x128x32xbf16>
    %12 = vector.shape_cast %11 : vector<1x128x32xbf16> to vector<128x32xbf16>
    %c0_9 = arith.constant 0 : index
    %c0_10 = arith.constant 0 : index
    %c0_11 = arith.constant 0 : index
    %13 = vector.load %arg5[%c0_9, %c0_10, %c0_11] : memref<1x32x128xbf16, #tpu.memory_space<vmem>>, vector<1x32x128xbf16>
    %14 = vector.shape_cast %13 : vector<1x32x128xbf16> to vector<32x128xbf16>
    %cst = arith.constant dense<0.000000e+00> : vector<128x128xf32>
    %15 = tpu.matmul %12, %14, %cst {dimension_numbers = #tpu.dot_dimension_numbers<[1], [0], [0], [1], [0, 0, 1, 1], [], []>} : vector<128x32xbf16>, vector<32x128xbf16>, vector<128x128xf32> -> vector<128x128xf32>
    %16 = arith.addf %10, %15 : vector<128x128xf32>
    %c0_12 = arith.constant 0 : index
    %c0_13 = arith.constant 0 : index
    %17 = vector.load %arg9[%c0_12, %c0_13] : memref<128x128xf32, #tpu.memory_space<vmem>>, vector<128x128xf32>
    tpu.vector_store %arg9[%c0_12, %c0_13], %16 {strides = array<i32>} : memref<128x128xf32, #tpu.memory_space<vmem>>, vector<128x128xf32>,
    %c0_i32_14 = arith.constant 0 : i32
    %18 = arith.cmpi eq, %arg3, %c0_i32_14 : i32
    %19 = arith.extui %18 : i1 to i32
    %c0_i32_15 = arith.constant 0 : i32
    %20 = arith.cmpi ne, %19, %c0_i32_15 : i32
    scf.if %20 {
      %c0_16 = arith.constant 0 : index
      %c0_17 = arith.constant 0 : index
      %21 = vector.load %arg9[%c0_16, %c0_17] : memref<128x128xf32, #tpu.memory_space<vmem>>, vector<128x128xf32>
      %c0_18 = arith.constant 0 : index
      %c0_19 = arith.constant 0 : index
      %c0_20 = arith.constant 0 : index
      %22 = vector.load %arg6[%c0_18, %c0_19, %c0_20] : memref<1x128x128xf32, #tpu.memory_space<vmem>>, vector<1x128x128xf32>
      %23 = vector.shape_cast %22 : vector<1x128x128xf32> to vector<128x128xf32>
      %24 = vector.shape_cast %21 : vector<128x128xf32> to vector<1x128x128xf32>
      tpu.vector_store %arg6[%c0_18, %c0_19, %c0_20], %24 {strides = array<i32>} : memref<1x128x128xf32, #tpu.memory_space<vmem>>, vector<1x128x128xf32>,
      %c0_21 = arith.constant 0 : index
      %c0_22 = arith.constant 0 : index
      %25 = vector.load %arg7[%c0_21, %c0_22] : memref<1x128xf32, #tpu.memory_space<vmem>>, vector<1x128xf32>
      %cst_23 = arith.constant dense<0.000000e+00> : vector<128xf32>
      %26 = vector.multi_reduction <add>, %21, %cst_23 [0] : vector<128x128xf32> to vector<128xf32>
      %27 = vector.shape_cast %26 : vector<128xf32> to vector<1x128xf32>
      %28 = arith.addf %25, %27 : vector<1x128xf32>
      %c0_24 = arith.constant 0 : index
      %c0_25 = arith.constant 0 : index
      %29 = vector.load %arg7[%c0_24, %c0_25] : memref<1x128xf32, #tpu.memory_space<vmem>>, vector<1x128xf32>
      tpu.vector_store %arg7[%c0_24, %c0_25], %28 {strides = array<i32>} : memref<1x128xf32, #tpu.memory_space<vmem>>, vector<1x128xf32>,
      %c0_26 = arith.constant 0 : index
      %c0_27 = arith.constant 0 : index
      %30 = vector.load %arg8[%c0_26, %c0_27] : memref<1x128xf32, #tpu.memory_space<vmem>>, vector<1x128xf32>
      %31 = arith.mulf %21, %21 : vector<128x128xf32>
      %cst_28 = arith.constant dense<0.000000e+00> : vector<128xf32>
      %32 = vector.multi_reduction <add>, %31, %cst_28 [0] : vector<128x128xf32> to vector<128xf32>
      %33 = vector.shape_cast %32 : vector<128xf32> to vector<1x128xf32>
      %34 = arith.addf %30, %33 : vector<1x128xf32>
      %c0_29 = arith.constant 0 : index
      %c0_30 = arith.constant 0 : index
      %35 = vector.load %arg8[%c0_29, %c0_30] : memref<1x128xf32, #tpu.memory_space<vmem>>, vector<1x128xf32>
      tpu.vector_store %arg8[%c0_29, %c0_30], %34 {strides = array<i32>} : memref<1x128xf32, #tpu.memory_space<vmem>>, vector<1x128xf32>,
    } else {
    }
    return
  }
  func.func @transform_0(%arg0: i32, %arg1: i32, %arg2: i32, %arg3: i32) -> (i32, i32, i32) {
    %c0_i32 = arith.constant 0 : i32
    return %arg1, %arg2, %arg3 : i32, i32, i32
  }
  func.func @transform_1(%arg0: i32, %arg1: i32, %arg2: i32, %arg3: i32) -> (i32, i32, i32) {
    %c0_i32 = arith.constant 0 : i32
    return %arg1, %arg3, %arg0 : i32, i32, i32
  }
  func.func @transform_2(%arg0: i32, %arg1: i32, %arg2: i32, %arg3: i32) -> (i32, i32, i32) {
    %c0_i32 = arith.constant 0 : i32
    return %arg1, %arg2, %arg0 : i32, i32, i32
  }
  func.func @transform_3(%arg0: i32, %arg1: i32, %arg2: i32, %arg3: i32) -> (i32, i32) {
    %c0_i32 = arith.constant 0 : i32
    %c0_i32_0 = arith.constant 0 : i32
    return %c0_i32, %arg0 : i32, i32
  }
  func.func @transform_4(%arg0: i32, %arg1: i32, %arg2: i32, %arg3: i32) -> (i32, i32) {
    %c0_i32 = arith.constant 0 : i32
    %c0_i32_0 = arith.constant 0 : i32
    return %c0_i32, %arg0 : i32, i32
  }
}

module attributes {stable_mosaic.version = 11 : i64} {
  func.func @_bn_apply_kernel(%arg0: i32, %arg1: memref<512x128xf32, #tpu.memory_space<vmem>>, %arg2: memref<1x128xf32, #tpu.memory_space<vmem>>, %arg3: memref<1x128xf32, #tpu.memory_space<vmem>>, %arg4: memref<512x128xf32, #tpu.memory_space<vmem>>) attributes {dimension_semantics = [#tpu.dimension_semantics<parallel>], iteration_bounds = array<i64: 1>, scalar_prefetch = 0 : i64, scratch_operands = 0 : i64, tpu.core_type = #tpu.core_type<tc>, window_params = [{transform_indices = @transform_0, window_bounds = array<i64: 512, 128>}, {pipeline_mode = #tpu.pipeline_mode<synchronous>, transform_indices = @transform_1, window_bounds = array<i64: 1, 128>}, {pipeline_mode = #tpu.pipeline_mode<synchronous>, transform_indices = @transform_2, window_bounds = array<i64: 1, 128>}, {transform_indices = @transform_3, window_bounds = array<i64: 512, 128>}]} {
    %c0 = arith.constant 0 : index
    %c0_0 = arith.constant 0 : index
    %0 = vector.load %arg1[%c0, %c0_0] : memref<512x128xf32, #tpu.memory_space<vmem>>, vector<512x128xf32>
    %c0_1 = arith.constant 0 : index
    %c0_2 = arith.constant 0 : index
    %1 = vector.load %arg2[%c0_1, %c0_2] : memref<1x128xf32, #tpu.memory_space<vmem>>, vector<1x128xf32>
    %2 = vector.broadcast %1 : vector<1x128xf32> to vector<512x128xf32>
    %3 = arith.mulf %0, %2 : vector<512x128xf32>
    %c0_3 = arith.constant 0 : index
    %c0_4 = arith.constant 0 : index
    %4 = vector.load %arg3[%c0_3, %c0_4] : memref<1x128xf32, #tpu.memory_space<vmem>>, vector<1x128xf32>
    %5 = vector.broadcast %4 : vector<1x128xf32> to vector<512x128xf32>
    %6 = arith.addf %3, %5 : vector<512x128xf32>
    %c0_5 = arith.constant 0 : index
    %c0_6 = arith.constant 0 : index
    %7 = vector.load %arg4[%c0_5, %c0_6] : memref<512x128xf32, #tpu.memory_space<vmem>>, vector<512x128xf32>
    tpu.vector_store %arg4[%c0_5, %c0_6], %6 {strides = array<i32>} : memref<512x128xf32, #tpu.memory_space<vmem>>, vector<512x128xf32>,
    return
  }
  func.func @transform_0(%arg0: i32) -> (i32, i32) {
    %c0_i32 = arith.constant 0 : i32
    %c0_i32_0 = arith.constant 0 : i32
    return %arg0, %c0_i32 : i32, i32
  }
  func.func @transform_1(%arg0: i32) -> (i32, i32) {
    %c0_i32 = arith.constant 0 : i32
    %c0_i32_0 = arith.constant 0 : i32
    %c0_i32_1 = arith.constant 0 : i32
    return %c0_i32, %c0_i32_0 : i32, i32
  }
  func.func @transform_2(%arg0: i32) -> (i32, i32) {
    %c0_i32 = arith.constant 0 : i32
    %c0_i32_0 = arith.constant 0 : i32
    %c0_i32_1 = arith.constant 0 : i32
    return %c0_i32, %c0_i32_0 : i32, i32
  }
  func.func @transform_3(%arg0: i32) -> (i32, i32) {
    %c0_i32 = arith.constant 0 : i32
    %c0_i32_0 = arith.constant 0 : i32
    return %arg0, %c0_i32 : i32, i32
  }
}

</mosaic_0001>

<bundles_post_ra>
// kernel: unet_block_innermost.3
= control target key start
LH: loop header
LB: loop body
LE: loop exit
PB: predicated region body
PF: predicated region fallthrough
CT: control target
= control target key end

     0   :  { %vm136_vm0 = vcmask 523264   ;;  %s523_s1 = inlined_call_operand.vmem [shape: bf16[1,64,128], index: 1, kind: input, shape index: {}]   ;;  %s524_s0 = inlined_call_operand.vmem [shape: bf16[1,128,64], index: 0, kind: input, shape index: {}]   ;;  %s525_s2 = inlined_call_operand.vmem [shape: bf16[1,128,128], index: 2, kind: output, shape index: {}]  }
   0x1   :  { %v380_v0 = vld [vmem:[%s523_s1 + $0x18] sm:$0xff]  ;;  %v379_v1 = vld [vmem:[%s523_s1 + $0x10] sm:$0xff]  ;;  %v378_v2 = vld [vmem:[%s523_s1 + $0x8] sm:$0xff] }
   0x2   :  { %165 = vmatpush.bf16.msra.mxu0 %v380_v0  ;;  %428 = vmatpush.bf16.msra.mxu1 %v380_v0  ;;  %v377_v3 = vld [vmem:[%s523_s1] sm:$0xff]  ;;  %v371_v5 = vld [vmem:[%s524_s0 + $0x10] sm:$0xff]  ;;  %v370_v8 = vld [vmem:[%s524_s0 + $0x8] sm:$0xff] }
   0x3   :  { %429 = vmatpush.bf16.msra.mxu2 %v380_v0  ;;  %430 = vmatpush.bf16.msra.mxu3 %v380_v0  ;;  %v369_v4 = vld [vmem:[%s524_s0] sm:$0xff]  ;;  %v375_v7 = vld [vmem:[%s524_s0 + $0x30] sm:$0xff]  ;;  %v372_v9 = vld [vmem:[%s524_s0 + $0x18] sm:$0xff] }
   0x4   :  { %v373_v6 = vld [vmem:[%s524_s0 + $0x20] sm:$0xff]  ;;  %v374_v10 = vld [vmem:[%s524_s0 + $0x28] sm:$0xff]  ;;  %v376_v11 = vld [vmem:[%s524_s0 + $0x38] sm:$0xff] }
   0x6   :  { %166 = vmatpush.bf16.msra.mxu0 %v379_v1  ;;  %431 = vmatpush.bf16.msra.mxu1 %v379_v1 }
   0x7   :  { %432 = vmatpush.bf16.msra.mxu2 %v379_v1  ;;  %433 = vmatpush.bf16.msra.mxu3 %v379_v1 }
   0xa   :  { %167 = vmatpush.bf16.msra.mxu0 %v378_v2  ;;  %434 = vmatpush.bf16.msra.mxu1 %v378_v2 }
   0xb   :  { %435 = vmatpush.bf16.msra.mxu2 %v378_v2  ;;  %436 = vmatpush.bf16.msra.mxu3 %v378_v2 }
   0xe   :  { %168 = vmatpush.bf16.msra.mxu0 %v377_v3  ;;  %437 = vmatpush.bf16.msra.mxu1 %v377_v3 }
   0xf   :  { %438 = vmatpush.bf16.msra.mxu2 %v377_v3  ;;  %439 = vmatpush.bf16.msra.mxu3 %v377_v3 }
  0x11   :  { %361 = vmatmul.msk.bf16.vlgmr.msra.gmra.mxu0 %vm136_vm0, %v369_v4  ;;  %363 = vmatmul.msk.bf16.vlgmr.msra.gmra.mxu1 %vm136_vm0, %v371_v5 }
  0x12   :  { %365 = vmatmul.msk.bf16.vlgmr.msra.gmra.mxu2 %vm136_vm0, %v373_v6  ;;  %367 = vmatmul.msk.bf16.vlgmr.msra.gmra.mxu3 %vm136_vm0, %v375_v7 }
  0x21   :  { %362 = vmatmul.msk.bf16.gmra.mxu0 %vm136_vm0, %v370_v8  ;;  %364 = vmatmul.msk.bf16.gmra.mxu1 %vm136_vm0, %v372_v9 }
  0x22   :  { %366 = vmatmul.msk.bf16.gmra.mxu2 %vm136_vm0, %v374_v10  ;;  %368 = vmatmul.msk.bf16.gmra.mxu3 %vm136_vm0, %v376_v11 }
  0x8e   :  { %v170_v12 = vpop.f32.mrf.mxu0  ;;  %v180_v13 = vpop.f32.mrf.mxu1 }
  0x8f   :  { %v261_v18 = vmax.f32 %v170_v12, 0.0  ;;  %v265_v19 = vmax.f32 %v180_v13, 0.0 }
  0x95   :  { %v190_v14 = vpop.f32.mrf.mxu2  ;;  %v200_v15 = vpop.f32.mrf.mxu3 }
  0x96   :  { %v172_v16 = vpop.f32.mrf.mxu0  ;;  %v182_v17 = vpop.f32.mrf.mxu1  ;;  %v269_v26 = vmax.f32 %v190_v14, 0.0  ;;  %v273_v27 = vmax.f32 %v200_v15, 0.0 }
  0x97   :  { %v262_v20 = vmax.f32 %v172_v16, 0.0  ;;  %v266_v21 = vmax.f32 %v182_v17, 0.0 }
  0x99   :  { %v384_v22 = vpack.c.bf16 %v262_v20, %v261_v18  ;;  %v394_v23 = vpack.c.bf16 %v266_v21, %v265_v19 }
  0x9b   :  { %385 = vst [vmem:[%s525_s2] sm:$0xff] %v384_v22  }
  0x9c   :  { %422 = vst [vmem:[%s525_s2 + $0x10] sm:$0xff] %v394_v23  }
  0x9d   :  { %v192_v24 = vpop.f32.mrf.mxu2  ;;  %v202_v25 = vpop.f32.mrf.mxu3 }
  0x9e   :  { %v270_v28 = vmax.f32 %v192_v24, 0.0  ;;  %v274_v29 = vmax.f32 %v202_v25, 0.0  ;;  %v175_v30 = vpop.f32.mrf.mxu0  ;;  %v185_v31 = vpop.f32.mrf.mxu1 }
  0x9f   :  { %v263_v38 = vmax.f32 %v175_v30, 0.0  ;;  %v267_v39 = vmax.f32 %v185_v31, 0.0 }
  0xa0   :  { %v404_v32 = vpack.c.bf16 %v270_v28, %v269_v26  ;;  %v414_v33 = vpack.c.bf16 %v274_v29, %v273_v27 }
  0xa2   :  { %424 = vst [vmem:[%s525_s2 + $0x20] sm:$0xff] %v404_v32  }
  0xa3   :  { %426 = vst [vmem:[%s525_s2 + $0x30] sm:$0xff] %v414_v33  }
  0xa5   :  { %v195_v34 = vpop.f32.mrf.mxu2  ;;  %v205_v35 = vpop.f32.mrf.mxu3 }
  0xa6   :  { %v177_v36 = vpop.f32.mrf.mxu0  ;;  %v187_v37 = vpop.f32.mrf.mxu1  ;;  %v271_v46 = vmax.f32 %v195_v34, 0.0  ;;  %v275_v47 = vmax.f32 %v205_v35, 0.0 }
  0xa7   :  { %v264_v40 = vmax.f32 %v177_v36, 0.0  ;;  %v268_v41 = vmax.f32 %v187_v37, 0.0 }
  0xa9   :  { %v389_v42 = vpack.c.bf16 %v264_v40, %v263_v38  ;;  %v399_v43 = vpack.c.bf16 %v268_v41, %v267_v39 }
  0xab   :  { %421 = vst [vmem:[%s525_s2 + $0x8] sm:$0xff] %v389_v42  }
  0xac   :  { %423 = vst [vmem:[%s525_s2 + $0x18] sm:$0xff] %v399_v43  }
  0xad   :  { %v197_v44 = vpop.f32.mrf.mxu2  ;;  %v207_v45 = vpop.f32.mrf.mxu3 }
  0xae   :  { %v272_v48 = vmax.f32 %v197_v44, 0.0  ;;  %v276_v49 = vmax.f32 %v207_v45, 0.0 }
  0xb0   :  { %v409_v50 = vpack.c.bf16 %v272_v48, %v271_v46  ;;  %v419_v51 = vpack.c.bf16 %v276_v49, %v275_v47 }
  0xb2   :  { %425 = vst [vmem:[%s525_s2 + $0x28] sm:$0xff] %v409_v50  }
  0xb3   :  { %427 = vst [vmem:[%s525_s2 + $0x38] sm:$0xff] %v419_v51  }

// kernel: unet_block_innermost.4
= control target key start
LH: loop header
LB: loop body
LE: loop exit
PB: predicated region body
PF: predicated region fallthrough
CT: control target
= control target key end

     0   :  { %s990_s15 = smov 0   ;;  %s992_s16 = smov 0   ;;  %s1080_s0 = inlined_call_operand.vmem [shape: bf16[4,128,32], index: 0, kind: input, shape index: {}]   ;;  %s1081_s1 = inlined_call_operand.vmem [shape: bf16[4,32,128], index: 1, kind: input, shape index: {}]   ;;  %s1082_s2 = inlined_call_operand.vmem [shape: f32[4,128,128], index: 2, kind: output, shape index: {0}]   ;;  %s1083_s3 = inlined_call_operand.vmem [shape: f32[1,128], index: 3, kind: output, shape index: {1}]   ;;  %s1084_s4 = inlined_call_operand.vmem [shape: f32[1,128], index: 4, kind: output, shape index: {2}]  }
   0x1   :  { %s994_s17 = smov 0  }
   0x2 LB: > { %s37_s18 = sadd.s32 1, %s958_s16  ;;  %p833_p0 = scmp.ge.s32.totalorder %s962_s17, 1  ;;  %s962_s17 = sphi %s994_s17, %s15_s17   ;;  %s958_s16 = sphi %s992_s16, %s1086_s16   ;;  %s954_s15 = sphi %s990_s15, %s1085_s15  }
   0x3   : > { %p39_p1 = scmp.ge.s32.totalorder %s37_s18, 4  ;;  %p231_p2 = scmp.lt.s32.totalorder %s962_s17, 5 }
   0x5   : > { %s1088_s18 = smov (%p39_p1, %s37_s18), 0  ;;  %p232_p3 = pnand %p833_p0, %p231_p2 }
   0x6   : > { %p290_p4 = scmp.lt.s32.totalorder (!%p232_p3), %s954_s15, 3  ;;  %p335_p5 = scmp.eq.s32.totalorder (!%p232_p3), %s954_s15, 0 }
   0x7   : > { %235 = sbr.rel (%p232_p3) target bundleno = 218 (0xda), region = 28 }
   0xc   : > { %s1090_s15 = smov (!%p290_p4, %s954_s15), 3  ;;  %343 = sbr.rel (!%p335_p5) target bundleno = 17 (0x11), region = 32  ;;  %v964_v0 = vmov (%p335_p5), 0.0  }
   0xd   : > { %s894_s19 = sshll.u32 %s1090_s15, 6  ;;  %s895_s20 = sshll.u32 %s1090_s15, 4  ;;  %344 = vst [vmem:[%s1083_s3] sm:$0x1] (%p335_p5), %v964_v0 }
   0xe   : > { %s1011_s23 = scalar_lea.vmem %s1080_s0, %s894_s19  ;;  %s313_s26 = scalar_lea.vmem %s1081_s1, %s895_s20  ;;  %345 = vst [vmem:[%s1084_s4] sm:$0x1] (%p335_p5), %v964_v0 }
   0xf   : > { %s896_s27 = sshll.u32 %s1090_s15, 7 }
  0x10   : > { %s1019_s30 = scalar_lea.vmem %s1082_s2, %s896_s27 }
  0x11 PF: > { %v908_v1 = vld [vmem:[%s313_s26 + $0x8] sm:$0xff]  ;;  %v907_v2 = vld [vmem:[%s313_s26] sm:$0xff]  ;;  %v901_v4 = vld [vmem:[%s1011_s23 + $0x10] sm:$0xff]  ;;  %vm453_vm0 = vcmask 261120  }
  0x12   : > { %484 = vmatpush.bf16.msra.mxu0 %v908_v1  ;;  %909 = vmatpush.bf16.msra.mxu1 %v908_v1  ;;  %v899_v3 = vld [vmem:[%s1011_s23] sm:$0xff]  ;;  %v905_v6 = vld [vmem:[%s1011_s23 + $0x30] sm:$0xff]  ;;  %v900_v7 = vld [vmem:[%s1011_s23 + $0x8] sm:$0xff] }
  0x13   : > { %910 = vmatpush.bf16.msra.mxu2 %v908_v1  ;;  %911 = vmatpush.bf16.msra.mxu3 %v908_v1  ;;  %v903_v5 = vld [vmem:[%s1011_s23 + $0x20] sm:$0xff]  ;;  %v902_v8 = vld [vmem:[%s1011_s23 + $0x18] sm:$0xff]  ;;  %v904_v9 = vld [vmem:[%s1011_s23 + $0x28] sm:$0xff] }
  0x14   : > { %v906_v10 = vld [vmem:[%s1011_s23 + $0x38] sm:$0xff] }
  0x16   : > { %485 = vmatpush.bf16.msra.mxu0 %v907_v2  ;;  %912 = vmatpush.bf16.msra.mxu1 %v907_v2 }
  0x17   : > { %913 = vmatpush.bf16.msra.mxu2 %v907_v2  ;;  %914 = vmatpush.bf16.msra.mxu3 %v907_v2 }
  0x19   : > { %882 = vmatmul.msk.bf16.vlgmr.msra.gmra.mxu0 %vm453_vm0, %v899_v3  ;;  %884 = vmatmul.msk.bf16.vlgmr.msra.gmra.mxu1 %vm453_vm0, %v901_v4 }
  0x1a   : > { %886 = vmatmul.msk.bf16.vlgmr.msra.gmra.mxu2 %vm453_vm0, %v903_v5  ;;  %888 = vmatmul.msk.bf16.vlgmr.msra.gmra.mxu3 %vm453_vm0, %v905_v6 }
  0x29   : > { %883 = vmatmul.msk.bf16.gmra.mxu0 %vm453_vm0, %v900_v7  ;;  %885 = vmatmul.msk.bf16.gmra.mxu1 %vm453_vm0, %v902_v8 }
  0x2a   : > { %887 = vmatmul.msk.bf16.gmra.mxu2 %vm453_vm0, %v904_v9  ;;  %889 = vmatmul.msk.bf16.gmra.mxu3 %vm453_vm0, %v906_v10 }
  0x96   : > { %v487_v11 = vpop.f32.mrf.mxu0  ;;  %v497_v12 = vpop.f32.mrf.mxu1 }
  0x97   : > { %578 = vst [vmem:[%s1019_s30] sm:$0xff] %v487_v11  ;;  %v619_v22 = vmul.f32 %v487_v11, %v487_v11  ;;  %v623_v34 = vmul.f32 %v497_v12, %v497_v12 }
  0x98   : > { %582 = vst [vmem:[%s1019_s30 + $0x20] sm:$0xff] %v497_v12 }
  0x9d   : > { %v507_v13 = vpop.f32.mrf.mxu2  ;;  %v517_v14 = vpop.f32.mrf.mxu3 }
  0x9e   : > { %v489_v15 = vpop.f32.mrf.mxu0  ;;  %v499_v16 = vpop.f32.mrf.mxu1  ;;  %586 = vst [vmem:[%s1019_s30 + $0x40] sm:$0xff] %v507_v13  ;;  %v627_v48 = vmul.f32 %v507_v13, %v507_v13  ;;  %v631_v60 = vmul.f32 %v517_v14, %v517_v14 }
  0x9f   : > { %579 = vst [vmem:[%s1019_s30 + $0x8] sm:$0xff] %v489_v15  ;;  %v620_v21 = vmul.f32 %v489_v15, %v489_v15  ;;  %v595_v23 = vadd.f32 %v489_v15, %v487_v11  ;;  %v624_v37 = vmul.f32 %v499_v16, %v499_v16 }
  0xa0   : > { %583 = vst [vmem:[%s1019_s30 + $0x28] sm:$0xff] %v499_v16 }
  0xa1   : > { %590 = vst [vmem:[%s1019_s30 + $0x60] sm:$0xff] %v517_v14  ;;  %v635_v25 = vadd.f32 %v620_v21, %v619_v22  ;;  %v618_v21 = vld [vmem:[%s1084_s4] sm:$0x1] }
  0xa5   : > { %v509_v17 = vpop.f32.mrf.mxu2  ;;  %v519_v18 = vpop.f32.mrf.mxu3 }
  0xa6   : > { %v492_v19 = vpop.f32.mrf.mxu0  ;;  %v502_v20 = vpop.f32.mrf.mxu1  ;;  %587 = vst [vmem:[%s1019_s30 + $0x48] sm:$0xff] %v509_v17  ;;  %v628_v51 = vmul.f32 %v509_v17, %v509_v17  ;;  %v632_v63 = vmul.f32 %v519_v18, %v519_v18 }
  0xa7   : > { %580 = vst [vmem:[%s1019_s30 + $0x10] sm:$0xff] %v492_v19  ;;  %v621_v24 = vmul.f32 %v492_v19, %v492_v19  ;;  %v596_v26 = vadd.f32 %v595_v23, %v492_v19  ;;  %v625_v40 = vmul.f32 %v502_v20, %v502_v20 }
  0xa8   : > { %584 = vst [vmem:[%s1019_s30 + $0x30] sm:$0xff] %v502_v20 }
  0xa9   : > { %591 = vst [vmem:[%s1019_s30 + $0x68] sm:$0xff] %v519_v18  ;;  %v636_v31 = vadd.f32 %v635_v25, %v621_v24 }
  0xad   : > { %v512_v27 = vpop.f32.mrf.mxu2  ;;  %v522_v28 = vpop.f32.mrf.mxu3 }
  0xae   : > { %v494_v29 = vpop.f32.mrf.mxu0  ;;  %v504_v30 = vpop.f32.mrf.mxu1  ;;  %588 = vst [vmem:[%s1019_s30 + $0x50] sm:$0xff] %v512_v27  ;;  %v629_v55 = vmul.f32 %v512_v27, %v512_v27  ;;  %v633_v3 = vmul.f32 %v522_v28, %v522_v28 }
  0xaf   : > { %581 = vst [vmem:[%s1019_s30 + $0x18] sm:$0xff] %v494_v29  ;;  %v597_v32 = vadd.f32 %v596_v26, %v494_v29  ;;  %v622_v33 = vmul.f32 %v494_v29, %v494_v29  ;;  %v626_v46 = vmul.f32 %v504_v30, %v504_v30 }
  0xb0   : > { %585 = vst [vmem:[%s1019_s30 + $0x38] sm:$0xff] %v504_v30 }
  0xb1   : > { %v598_v35 = vadd.f32 %v597_v32, %v497_v12  ;;  %v637_v36 = vadd.f32 %v636_v31, %v622_v33  ;;  %592 = vst [vmem:[%s1019_s30 + $0x70] sm:$0xff] %v522_v28 }
  0xb3   : > { %v638_v38 = vadd.f32 %v637_v36, %v623_v34  ;;  %v599_v39 = vadd.f32 %v598_v35, %v499_v16 }
  0xb5   : > { %v600_v41 = vadd.f32 %v599_v39, %v502_v20  ;;  %v639_v42 = vadd.f32 %v638_v38, %v624_v37  ;;  %v514_v43 = vpop.f32.mrf.mxu2  ;;  %v524_v44 = vpop.f32.mrf.mxu3 }
  0xb6   : > { %589 = vst [vmem:[%s1019_s30 + $0x58] sm:$0xff] %v514_v43  ;;  %v630_v59 = vmul.f32 %v514_v43, %v514_v43  ;;  %v634_v7 = vmul.f32 %v524_v44, %v524_v44 }
  0xb7   : > { %v601_v45 = vadd.f32 %v600_v41, %v504_v30  ;;  %v640_v47 = vadd.f32 %v639_v42, %v625_v40  ;;  %593 = vst [vmem:[%s1019_s30 + $0x78] sm:$0xff] %v524_v44 }
  0xb9   : > { %v602_v49 = vadd.f32 %v601_v45, %v507_v13  ;;  %v641_v50 = vadd.f32 %v640_v47, %v626_v46 }
  0xbb   : > { %v642_v52 = vadd.f32 %v641_v50, %v627_v48  ;;  %v603_v53 = vadd.f32 %v602_v49, %v509_v17 }
  0xbd   : > { %v604_v54 = vadd.f32 %v603_v53, %v512_v27  ;;  %v643_v56 = vadd.f32 %v642_v52, %v628_v51 }
  0xbf   : > { %v644_v57 = vadd.f32 %v643_v56, %v629_v55  ;;  %v605_v58 = vadd.f32 %v604_v54, %v514_v43 }
  0xc1   : > { %v606_v61 = vadd.f32 %v605_v58, %v517_v14  ;;  %v645_v62 = vadd.f32 %v644_v57, %v630_v59 }
  0xc3   : > { %v646_v0 = vadd.f32 %v645_v62, %v631_v60  ;;  %v607_v1 = vadd.f32 %v606_v61, %v519_v18  ;;  %v594_v18 = vld [vmem:[%s1083_s3] sm:$0x1] }
  0xc5   : > { %v608_v2 = vadd.f32 %v607_v1, %v522_v28  ;;  %v647_v4 = vadd.f32 %v646_v0, %v632_v63 }
  0xc7   : > { %v648_v5 = vadd.f32 %v647_v4, %v633_v3  ;;  %v609_v6 = vadd.f32 %v608_v2, %v524_v44 }
  0xc9   : > { %v610_v8 = vrot.slane %v609_v6, 4  ;;  %v649_v9 = vadd.f32 %v648_v5, %v634_v7 }
  0xcb   : > { %v611_v10 = vadd.f32 %v610_v8, %v609_v6  ;;  %v650_v11 = vrot.slane %v649_v9, 4 }
  0xcd   : > { %v612_v12 = vrot.slane %v611_v10, 2  ;;  %v651_v13 = vadd.f32 %v650_v11, %v649_v9 }
  0xcf   : > { %v613_v15 = vadd.f32 %v612_v12, %v611_v10  ;;  %v652_v16 = vrot.slane %v651_v13, 2 }
  0xd1   : > { %v614_v17 = vrot.slane %v613_v15, 1  ;;  %v653_v14 = vadd.f32 %v652_v16, %v651_v13 }
  0xd3   : > { %v615_v19 = vadd.f32 %v614_v17, %v613_v15  ;;  %v654_v20 = vrot.slane %v653_v14, 1 }
  0xd5   : > { %v616_v22 = vadd.f32 %v615_v19, %v594_v18  ;;  %v655_v23 = vadd.f32 %v654_v20, %v653_v14 }
  0xd7   : > { %617 = vst [vmem:[%s1083_s3] sm:$0x1] %v616_v22  ;;  %v656_v24 = vadd.f32 %v655_v23, %v618_v21 }
  0xd9   : > { %657 = vst [vmem:[%s1084_s4] sm:$0x1] %v656_v24 }
  0xda PF: > { %s15_s17 = sadd.s32 1, %s962_s17   ;;  %s1085_s15 = smov %s958_s16 }
  0xdb   : > { %p12_p6 = scmp.ge.s32.totalorder %s15_s17, 6   ;;  %s1086_s16 = smov %s1088_s18 }
  0xdd   :  { %14 = sbr.rel (!%p12_p6) target bundleno = 2 (0x2), region = 97 }

// kernel: unet_block_innermost.5
= control target key start
LH: loop header
LB: loop body
LE: loop exit
PB: predicated region body
PF: predicated region fallthrough
CT: control target
= control target key end

     0   :  { %s829_s0 = inlined_call_operand.vmem [shape: f32[512,128], index: 0, kind: input, shape index: {}]   ;;  %s830_s1 = inlined_call_operand.vmem [shape: f32[1,128], index: 1, kind: input, shape index: {}]   ;;  %s831_s2 = inlined_call_operand.vmem [shape: f32[1,128], index: 2, kind: input, shape index: {}]   ;;  %s832_s3 = inlined_call_operand.vmem [shape: f32[512,128], index: 3, kind: output, shape index: {}]  }
   0x1   :  { %v14_v0 = vld [vmem:[%s829_s0] sm:$0xff]  ;;  %v15_v3 = vld [vmem:[%s829_s0 + $0x8] sm:$0xff]  ;;  %v16_v6 = vld [vmem:[%s829_s0 + $0x10] sm:$0xff] }
   0x2   :  { %v310_v1 = vld [vmem:[%s830_s1] ss:$0 sm:$0xff]  ;;  %v17_v7 = vld [vmem:[%s829_s0 + $0x18] sm:$0xff]  ;;  %v19_v12 = vld [vmem:[%s829_s0 + $0x28] sm:$0xff] }
   0x3   :  { %v315_v2 = vld [vmem:[%s831_s2] ss:$0 sm:$0xff]  ;;  %v82_v4 = vmul.f32 %v310_v1, %v14_v0  ;;  %v83_v5 = vmul.f32 %v310_v1, %v15_v3  ;;  %v84_v9 = vmul.f32 %v310_v1, %v16_v6  ;;  %v85_v10 = vmul.f32 %v310_v1, %v17_v7  ;;  %v20_v13 = vld [vmem:[%s829_s0 + $0x30] sm:$0xff]  ;;  %v21_v14 = vld [vmem:[%s829_s0 + $0x38] sm:$0xff] }
   0x4   :  { %v18_v8 = vld [vmem:[%s829_s0 + $0x20] sm:$0xff]  ;;  %v87_v17 = vmul.f32 %v310_v1, %v19_v12  ;;  %v88_v18 = vmul.f32 %v310_v1, %v20_v13  ;;  %v23_v20 = vld [vmem:[%s829_s0 + $0x48] sm:$0xff]  ;;  %v89_v23 = vmul.f32 %v310_v1, %v21_v14  ;;  %v24_v24 = vld [vmem:[%s829_s0 + $0x50] sm:$0xff] }
   0x5   :  { %v86_v11 = vmul.f32 %v310_v1, %v18_v8  ;;  %v150_v15 = vadd.f32 %v315_v2, %v82_v4  ;;  %v151_v16 = vadd.f32 %v315_v2, %v83_v5  ;;  %v22_v19 = vld [vmem:[%s829_s0 + $0x40] sm:$0xff]  ;;  %v152_v21 = vadd.f32 %v315_v2, %v84_v9  ;;  %v25_v27 = vld [vmem:[%s829_s0 + $0x58] sm:$0xff]  ;;  %v27_v33 = vld [vmem:[%s829_s0 + $0x68] sm:$0xff] }
   0x6   :  { %v153_v22 = vadd.f32 %v315_v2, %v85_v10  ;;  %v90_v26 = vmul.f32 %v310_v1, %v22_v19  ;;  %v155_v28 = vadd.f32 %v315_v2, %v87_v17  ;;  %v91_v29 = vmul.f32 %v310_v1, %v23_v20  ;;  %v26_v30 = vld [vmem:[%s829_s0 + $0x60] sm:$0xff]  ;;  %v28_v36 = vld [vmem:[%s829_s0 + $0x70] sm:$0xff]  ;;  %v29_v39 = vld [vmem:[%s829_s0 + $0x78] sm:$0xff] }
   0x7   :  { %214 = vst [vmem:[%s832_s3] sm:$0xff] %v150_v15  ;;  %v154_v25 = vadd.f32 %v315_v2, %v86_v11  ;;  %v156_v31 = vadd.f32 %v315_v2, %v88_v18  ;;  %v92_v32 = vmul.f32 %v310_v1, %v24_v24  ;;  %v157_v34 = vadd.f32 %v315_v2, %v89_v23  ;;  %v30_v42 = vld [vmem:[%s829_s0 + $0x80] sm:$0xff]  ;;  %v31_v45 = vld [vmem:[%s829_s0 + $0x88] sm:$0xff]  ;;  %v32_v48 = vld [vmem:[%s829_s0 + $0x90] sm:$0xff] }
   0x8   :  { %215 = vst [vmem:[%s832_s3 + $0x8] sm:$0xff] %v151_v16  ;;  %v93_v35 = vmul.f32 %v310_v1, %v25_v27  ;;  %v158_v37 = vadd.f32 %v315_v2, %v90_v26  ;;  %v94_v38 = vmul.f32 %v310_v1, %v26_v30  ;;  %v159_v40 = vadd.f32 %v315_v2, %v91_v29  ;;  %v33_v51 = vld [vmem:[%s829_s0 + $0x98] sm:$0xff]  ;;  %v34_v54 = vld [vmem:[%s829_s0 + $0xa0] sm:$0xff]  ;;  %v35_v57 = vld [vmem:[%s829_s0 + $0xa8] sm:$0xff] }
   0x9   :  { %216 = vst [vmem:[%s832_s3 + $0x10] sm:$0xff] %v152_v21  ;;  %v95_v41 = vmul.f32 %v310_v1, %v27_v33  ;;  %v160_v43 = vadd.f32 %v315_v2, %v92_v32  ;;  %v96_v44 = vmul.f32 %v310_v1, %v28_v36  ;;  %v97_v47 = vmul.f32 %v310_v1, %v29_v39  ;;  %v36_v60 = vld [vmem:[%s829_s0 + $0xb0] sm:$0xff]  ;;  %v37_v63 = vld [vmem:[%s829_s0 + $0xb8] sm:$0xff]  ;;  %v38_v4 = vld [vmem:[%s829_s0 + $0xc0] sm:$0xff] }
   0xa   :  { %217 = vst [vmem:[%s832_s3 + $0x18] sm:$0xff] %v153_v22  ;;  %v161_v46 = vadd.f32 %v315_v2, %v93_v35  ;;  %v162_v49 = vadd.f32 %v315_v2, %v94_v38  ;;  %v98_v50 = vmul.f32 %v310_v1, %v30_v42  ;;  %v99_v53 = vmul.f32 %v310_v1, %v31_v45  ;;  %v39_v7 = vld [vmem:[%s829_s0 + $0xc8] sm:$0xff]  ;;  %v40_v10 = vld [vmem:[%s829_s0 + $0xd0] sm:$0xff]  ;;  %v41_v13 = vld [vmem:[%s829_s0 + $0xd8] sm:$0xff] }
   0xb   :  { %218 = vst [vmem:[%s832_s3 + $0x20] sm:$0xff] %v154_v25  ;;  %v163_v52 = vadd.f32 %v315_v2, %v95_v41  ;;  %v164_v55 = vadd.f32 %v315_v2, %v96_v44  ;;  %v100_v56 = vmul.f32 %v310_v1, %v32_v48  ;;  %v165_v58 = vadd.f32 %v315_v2, %v97_v47  ;;  %v42_v16 = vld [vmem:[%s829_s0 + $0xe0] sm:$0xff]  ;;  %v43_v19 = vld [vmem:[%s829_s0 + $0xe8] sm:$0xff]  ;;  %v44_v22 = vld [vmem:[%s829_s0 + $0xf0] sm:$0xff] }
   0xc   :  { %219 = vst [vmem:[%s832_s3 + $0x28] sm:$0xff] %v155_v28  ;;  %v101_v59 = vmul.f32 %v310_v1, %v33_v51  ;;  %v166_v61 = vadd.f32 %v315_v2, %v98_v50  ;;  %v102_v62 = vmul.f32 %v310_v1, %v34_v54  ;;  %v167_v0 = vadd.f32 %v315_v2, %v99_v53  ;;  %v45_v25 = vld [vmem:[%s829_s0 + $0xf8] sm:$0xff]  ;;  %v46_v28 = vld [vmem:[%s829_s0 + $0x100] sm:$0xff]  ;;  %v51_v44 = vld [vmem:[%s829_s0 + $0x128] sm:$0xff] }
   0xd   :  { %220 = vst [vmem:[%s832_s3 + $0x30] sm:$0xff] %v156_v31  ;;  %v103_v3 = vmul.f32 %v310_v1, %v35_v57  ;;  %v168_v5 = vadd.f32 %v315_v2, %v100_v56  ;;  %v104_v6 = vmul.f32 %v310_v1, %v36_v60  ;;  %v105_v9 = vmul.f32 %v310_v1, %v37_v63  ;;  %v47_v31 = vld [vmem:[%s829_s0 + $0x108] sm:$0xff]  ;;  %v77_v41 = vld [vmem:[%s829_s0 + $0x1f8] sm:$0xff]  ;;  %v52_v47 = vld [vmem:[%s829_s0 + $0x130] sm:$0xff] }
   0xe   :  { %221 = vst [vmem:[%s832_s3 + $0x38] sm:$0xff] %v157_v34  ;;  %v169_v8 = vadd.f32 %v315_v2, %v101_v59  ;;  %v170_v11 = vadd.f32 %v315_v2, %v102_v62  ;;  %v106_v12 = vmul.f32 %v310_v1, %v38_v4  ;;  %v107_v15 = vmul.f32 %v310_v1, %v39_v7  ;;  %v48_v34 = vld [vmem:[%s829_s0 + $0x110] sm:$0xff]  ;;  %v53_v51 = vld [vmem:[%s829_s0 + $0x138] sm:$0xff]  ;;  %v54_v54 = vld [vmem:[%s829_s0 + $0x140] sm:$0xff] }
   0xf   :  { %222 = vst [vmem:[%s832_s3 + $0x40] sm:$0xff] %v158_v37  ;;  %v171_v14 = vadd.f32 %v315_v2, %v103_v3  ;;  %v172_v17 = vadd.f32 %v315_v2, %v104_v6  ;;  %v108_v18 = vmul.f32 %v310_v1, %v40_v10  ;;  %v173_v20 = vadd.f32 %v315_v2, %v105_v9  ;;  %v49_v37 = vld [vmem:[%s829_s0 + $0x118] sm:$0xff] }
  0x10   :  { %223 = vst [vmem:[%s832_s3 + $0x48] sm:$0xff] %v159_v40  ;;  %v109_v21 = vmul.f32 %v310_v1, %v41_v13  ;;  %v174_v23 = vadd.f32 %v315_v2, %v106_v12  ;;  %v110_v24 = vmul.f32 %v310_v1, %v42_v16  ;;  %v175_v26 = vadd.f32 %v315_v2, %v107_v15  ;;  %v50_v40 = vld [vmem:[%s829_s0 + $0x120] sm:$0xff] }
  0x11   :  { %224 = vst [vmem:[%s832_s3 + $0x50] sm:$0xff] %v160_v43  ;;  %v111_v27 = vmul.f32 %v310_v1, %v43_v19  ;;  %v176_v29 = vadd.f32 %v315_v2, %v108_v18  ;;  %v112_v30 = vmul.f32 %v310_v1, %v44_v22  ;;  %v113_v33 = vmul.f32 %v310_v1, %v45_v25 }
  0x12   :  { %225 = vst [vmem:[%s832_s3 + $0x58] sm:$0xff] %v161_v46  ;;  %v177_v32 = vadd.f32 %v315_v2, %v109_v21  ;;  %v178_v35 = vadd.f32 %v315_v2, %v110_v24  ;;  %v114_v36 = vmul.f32 %v310_v1, %v46_v28  ;;  %v115_v39 = vmul.f32 %v310_v1, %v47_v31 }
  0x13   :  { %226 = vst [vmem:[%s832_s3 + $0x60] sm:$0xff] %v162_v49  ;;  %v179_v38 = vadd.f32 %v315_v2, %v111_v27  ;;  %v180_v42 = vadd.f32 %v315_v2, %v112_v30  ;;  %v116_v43 = vmul.f32 %v310_v1, %v48_v34  ;;  %v181_v45 = vadd.f32 %v315_v2, %v113_v33 }
  0x14   :  { %227 = vst [vmem:[%s832_s3 + $0x68] sm:$0xff] %v163_v52  ;;  %v117_v46 = vmul.f32 %v310_v1, %v49_v37  ;;  %v145_v48 = vmul.f32 %v310_v1, %v77_v41  ;;  %v182_v49 = vadd.f32 %v315_v2, %v114_v36  ;;  %v118_v50 = vmul.f32 %v310_v1, %v50_v40  ;;  %v70_v41 = vld [vmem:[%s829_s0 + $0x1c0] sm:$0xff] }
  0x15   :  { %228 = vst [vmem:[%s832_s3 + $0x70] sm:$0xff] %v164_v55  ;;  %v183_v52 = vadd.f32 %v315_v2, %v115_v39  ;;  %v119_v53 = vmul.f32 %v310_v1, %v51_v44  ;;  %v184_v56 = vadd.f32 %v315_v2, %v116_v43  ;;  %v120_v57 = vmul.f32 %v310_v1, %v52_v47  ;;  %v71_v44 = vld [vmem:[%s829_s0 + $0x1c8] sm:$0xff]  ;;  %v72_v47 = vld [vmem:[%s829_s0 + $0x1d0] sm:$0xff] }
  0x16   :  { %229 = vst [vmem:[%s832_s3 + $0x78] sm:$0xff] %v165_v58  ;;  %v604_v55 = vadd.f32 %v315_v2, %v145_v48  ;;  %v55_v58 = vld [vmem:[%s829_s0 + $0x148] sm:$0xff]  ;;  %v185_v59 = vadd.f32 %v315_v2, %v117_v46  ;;  %v121_v60 = vmul.f32 %v310_v1, %v53_v51  ;;  %v186_v62 = vadd.f32 %v315_v2, %v118_v50  ;;  %v73_v50 = vld [vmem:[%s829_s0 + $0x1d8] sm:$0xff] }
  0x17   :  { %230 = vst [vmem:[%s832_s3 + $0x80] sm:$0xff] %v166_v61  ;;  %v56_v61 = vld [vmem:[%s829_s0 + $0x150] sm:$0xff]  ;;  %v122_v63 = vmul.f32 %v310_v1, %v54_v54  ;;  %v187_v3 = vadd.f32 %v315_v2, %v119_v53  ;;  %v123_v4 = vmul.f32 %v310_v1, %v55_v58  ;;  %v188_v6 = vadd.f32 %v315_v2, %v120_v57  ;;  %v74_v53 = vld [vmem:[%s829_s0 + $0x1e0] sm:$0xff]  ;;  %v75_v57 = vld [vmem:[%s829_s0 + $0x1e8] sm:$0xff] }
  0x18   :  { %231 = vst [vmem:[%s832_s3 + $0x88] sm:$0xff] %v167_v0  ;;  %v57_v0 = vld [vmem:[%s829_s0 + $0x158] sm:$0xff]  ;;  %v124_v7 = vmul.f32 %v310_v1, %v56_v61  ;;  %v189_v9 = vadd.f32 %v315_v2, %v121_v60  ;;  %v76_v60 = vld [vmem:[%s829_s0 + $0x1f0] sm:$0xff] }
  0x19   :  { %232 = vst [vmem:[%s832_s3 + $0x90] sm:$0xff] %v168_v5  ;;  %v58_v5 = vld [vmem:[%s829_s0 + $0x160] sm:$0xff]  ;;  %v125_v10 = vmul.f32 %v310_v1, %v57_v0  ;;  %v190_v12 = vadd.f32 %v315_v2, %v122_v63  ;;  %v191_v15 = vadd.f32 %v315_v2, %v123_v4  ;;  %v143_v0 = vmul.f32 %v310_v1, %v75_v57 }
  0x1a   :  { %233 = vst [vmem:[%s832_s3 + $0x98] sm:$0xff] %v169_v8  ;;  %v59_v8 = vld [vmem:[%s829_s0 + $0x168] sm:$0xff]  ;;  %v126_v13 = vmul.f32 %v310_v1, %v58_v5  ;;  %v192_v18 = vadd.f32 %v315_v2, %v124_v7  ;;  %v144_v4 = vmul.f32 %v310_v1, %v76_v60 }
  0x1b   :  { %234 = vst [vmem:[%s832_s3 + $0xa0] sm:$0xff] %v170_v11  ;;  %v60_v11 = vld [vmem:[%s829_s0 + $0x170] sm:$0xff]  ;;  %v127_v16 = vmul.f32 %v310_v1, %v59_v8  ;;  %v193_v21 = vadd.f32 %v315_v2, %v125_v10  ;;  %v211_v7 = vadd.f32 %v315_v2, %v143_v0 }
  0x1c   :  { %235 = vst [vmem:[%s832_s3 + $0xa8] sm:$0xff] %v171_v14  ;;  %v61_v14 = vld [vmem:[%s829_s0 + $0x178] sm:$0xff]  ;;  %v128_v19 = vmul.f32 %v310_v1, %v60_v11  ;;  %v194_v24 = vadd.f32 %v315_v2, %v126_v13 }
  0x1d   :  { %236 = vst [vmem:[%s832_s3 + $0xb0] sm:$0xff] %v172_v17  ;;  %v62_v17 = vld [vmem:[%s829_s0 + $0x180] sm:$0xff]  ;;  %v129_v22 = vmul.f32 %v310_v1, %v61_v14  ;;  %v195_v27 = vadd.f32 %v315_v2, %v127_v16 }
  0x1e   :  { %237 = vst [vmem:[%s832_s3 + $0xb8] sm:$0xff] %v173_v20  ;;  %v63_v20 = vld [vmem:[%s829_s0 + $0x188] sm:$0xff]  ;;  %v130_v25 = vmul.f32 %v310_v1, %v62_v17  ;;  %v196_v30 = vadd.f32 %v315_v2, %v128_v19 }
  0x1f   :  { %238 = vst [vmem:[%s832_s3 + $0xc0] sm:$0xff] %v174_v23  ;;  %v64_v23 = vld [vmem:[%s829_s0 + $0x190] sm:$0xff]  ;;  %v131_v28 = vmul.f32 %v310_v1, %v63_v20  ;;  %v197_v33 = vadd.f32 %v315_v2, %v129_v22 }
  0x20   :  { %239 = vst [vmem:[%s832_s3 + $0xc8] sm:$0xff] %v175_v26  ;;  %v65_v26 = vld [vmem:[%s829_s0 + $0x198] sm:$0xff]  ;;  %v132_v31 = vmul.f32 %v310_v1, %v64_v23  ;;  %v198_v36 = vadd.f32 %v315_v2, %v130_v25 }
  0x21   :  { %240 = vst [vmem:[%s832_s3 + $0xd0] sm:$0xff] %v176_v29  ;;  %v66_v29 = vld [vmem:[%s829_s0 + $0x1a0] sm:$0xff]  ;;  %v133_v34 = vmul.f32 %v310_v1, %v65_v26  ;;  %v199_v39 = vadd.f32 %v315_v2, %v131_v28 }
  0x22   :  { %241 = vst [vmem:[%s832_s3 + $0xd8] sm:$0xff] %v177_v32  ;;  %v67_v32 = vld [vmem:[%s829_s0 + $0x1a8] sm:$0xff]  ;;  %v134_v37 = vmul.f32 %v310_v1, %v66_v29 }
  0x23   :  { %242 = vst [vmem:[%s832_s3 + $0xe0] sm:$0xff] %v178_v35  ;;  %v68_v35 = vld [vmem:[%s829_s0 + $0x1b0] sm:$0xff]  ;;  %v135_v40 = vmul.f32 %v310_v1, %v67_v32 }
  0x24   :  { %243 = vst [vmem:[%s832_s3 + $0xe8] sm:$0xff] %v179_v38  ;;  %v69_v38 = vld [vmem:[%s829_s0 + $0x1b8] sm:$0xff]  ;;  %v136_v43 = vmul.f32 %v310_v1, %v68_v35  ;;  %v202_v48 = vadd.f32 %v315_v2, %v134_v37 }
  0x25   :  { %244 = vst [vmem:[%s832_s3 + $0xf0] sm:$0xff] %v180_v42  ;;  %v200_v42 = vadd.f32 %v315_v2, %v132_v31  ;;  %v137_v46 = vmul.f32 %v310_v1, %v69_v38  ;;  %v203_v51 = vadd.f32 %v315_v2, %v135_v40 }
  0x26   :  { %245 = vst [vmem:[%s832_s3 + $0xf8] sm:$0xff] %v181_v45  ;;  %v201_v45 = vadd.f32 %v315_v2, %v133_v34  ;;  %v204_v54 = vadd.f32 %v315_v2, %v136_v43 }
  0x27   :  { %246 = vst [vmem:[%s832_s3 + $0x100] sm:$0xff] %v182_v49  ;;  %v138_v49 = vmul.f32 %v310_v1, %v70_v41  ;;  %v205_v58 = vadd.f32 %v315_v2, %v137_v46 }
  0x28   :  { %247 = vst [vmem:[%s832_s3 + $0x108] sm:$0xff] %v183_v52  ;;  %v139_v52 = vmul.f32 %v310_v1, %v71_v44 }
  0x29   :  { %248 = vst [vmem:[%s832_s3 + $0x110] sm:$0xff] %v184_v56  ;;  %v140_v56 = vmul.f32 %v310_v1, %v72_v47  ;;  %v206_v61 = vadd.f32 %v315_v2, %v138_v49 }
  0x2a   :  { %249 = vst [vmem:[%s832_s3 + $0x118] sm:$0xff] %v185_v59  ;;  %v141_v59 = vmul.f32 %v310_v1, %v73_v50  ;;  %v207_v63 = vadd.f32 %v315_v2, %v139_v52 }
  0x2b   :  { %250 = vst [vmem:[%s832_s3 + $0x120] sm:$0xff] %v186_v62  ;;  %v142_v62 = vmul.f32 %v310_v1, %v74_v53  ;;  %v212_v1 = vadd.f32 %v315_v2, %v144_v4 }
  0x2c   :  { %251 = vst [vmem:[%s832_s3 + $0x128] sm:$0xff] %v187_v3  ;;  %v208_v3 = vadd.f32 %v315_v2, %v140_v56  ;;  %v209_v5 = vadd.f32 %v315_v2, %v141_v59 }
  0x2d   :  { %252 = vst [vmem:[%s832_s3 + $0x130] sm:$0xff] %v188_v6  ;;  %v210_v6 = vadd.f32 %v315_v2, %v142_v62 }
  0x2e   :  { %253 = vst [vmem:[%s832_s3 + $0x138] sm:$0xff] %v189_v9 }
  0x2f   :  { %254 = vst [vmem:[%s832_s3 + $0x140] sm:$0xff] %v190_v12 }
  0x30   :  { %255 = vst [vmem:[%s832_s3 + $0x148] sm:$0xff] %v191_v15 }
  0x31   :  { %256 = vst [vmem:[%s832_s3 + $0x150] sm:$0xff] %v192_v18 }
  0x32   :  { %257 = vst [vmem:[%s832_s3 + $0x158] sm:$0xff] %v193_v21 }
  0x33   :  { %258 = vst [vmem:[%s832_s3 + $0x160] sm:$0xff] %v194_v24 }
  0x34   :  { %259 = vst [vmem:[%s832_s3 + $0x168] sm:$0xff] %v195_v27 }
  0x35   :  { %260 = vst [vmem:[%s832_s3 + $0x170] sm:$0xff] %v196_v30 }
  0x36   :  { %261 = vst [vmem:[%s832_s3 + $0x178] sm:$0xff] %v197_v33 }
  0x37   :  { %262 = vst [vmem:[%s832_s3 + $0x180] sm:$0xff] %v198_v36 }
  0x38   :  { %263 = vst [vmem:[%s832_s3 + $0x188] sm:$0xff] %v199_v39 }
  0x39   :  { %264 = vst [vmem:[%s832_s3 + $0x190] sm:$0xff] %v200_v42 }
  0x3a   :  { %265 = vst [vmem:[%s832_s3 + $0x198] sm:$0xff] %v201_v45 }
  0x3b   :  { %266 = vst [vmem:[%s832_s3 + $0x1a0] sm:$0xff] %v202_v48 }
  0x3c   :  { %267 = vst [vmem:[%s832_s3 + $0x1a8] sm:$0xff] %v203_v51 }
  0x3d   :  { %268 = vst [vmem:[%s832_s3 + $0x1b0] sm:$0xff] %v204_v54 }
  0x3e   :  { %269 = vst [vmem:[%s832_s3 + $0x1b8] sm:$0xff] %v205_v58 }
  0x3f   :  { %270 = vst [vmem:[%s832_s3 + $0x1c0] sm:$0xff] %v206_v61 }
  0x40   :  { %271 = vst [vmem:[%s832_s3 + $0x1c8] sm:$0xff] %v207_v63 }
  0x41   :  { %272 = vst [vmem:[%s832_s3 + $0x1d0] sm:$0xff] %v208_v3 }
  0x42   :  { %273 = vst [vmem:[%s832_s3 + $0x1d8] sm:$0xff] %v209_v5 }
  0x43   :  { %274 = vst [vmem:[%s832_s3 + $0x1e0] sm:$0xff] %v210_v6 }
  0x44   :  { %275 = vst [vmem:[%s832_s3 + $0x1e8] sm:$0xff] %v211_v7 }
  0x45   :  { %276 = vst [vmem:[%s832_s3 + $0x1f0] sm:$0xff] %v212_v1 }
  0x46   :  { %277 = vst [vmem:[%s832_s3 + $0x1f8] sm:$0xff] %v604_v55 }

</bundles_post_ra>
